<compile_context>
chip_gen: v7x
topology: tpu7x:2x2x1
jax: 0.10.0
libtpu: 0.0.40
codegen_flags: <defaults>
</compile_context>

<pallas_src>
import functools

import numpy as np

import jax
import jax.numpy as jnp
from jax.experimental import pallas as pl
from jax.experimental.pallas import tpu as pltpu

LANE = 128
SUBLANE = 8
MAX_TILE_ROWS = 4096                 # 4096 x 128 x 4B = 2 MiB per streamed block
RESIDENT_MAX_ELEMS = 2 * 1024 * 1024 # fused resident path for <= 2M f32 elements
RESIDENT_VMEM_LIMIT = 48 * 1024 * 1024
STREAM_VMEM_LIMIT = 32 * 1024 * 1024

_KEY_FLIP = 0x7FFFFFFF               # flip of the low 31 bits for the monotone remap
_INT32_MIN = -2147483648


# ----------------------------------------------------------------------------
# Resident fused kernel: one DMA in, radix-select the median, binarize, one DMA out.
# ----------------------------------------------------------------------------
def _fused_select_binarize_kernel(x_ref, o_ref, key_ref, *, k):
    """Full-array radix select of the lower median + fused binarize.

    float32 -> monotone signed int32 key:  key = bits             (bits >= 0)
                                           key = bits ^ 0x7FFFFFFF (bits <  0)
    Wrapper padding uses the bit pattern 0x7FFFFFFF, so padded elements get
    key == INT32_MAX and never enter any strict-< count (nor the median max).
    """
    bits = pltpu.bitcast(x_ref[...], jnp.int32)
    key_ref[...] = jnp.where(bits >= 0, bits, bits ^ jnp.int32(_KEY_FLIP))

    # Sign bit (step 0): median key is non-negative iff #negatives <= k.
    n_neg = jnp.sum((key_ref[...] < 0).astype(jnp.int32))
    r0 = jnp.where(n_neg <= jnp.int32(k), jnp.int32(0), jnp.int32(_INT32_MIN))

    # Remaining 31 bits, MSB -> LSB; only scalars cross loop iterations.
    def body(_, carry):
        r, m = carry
        trial = r | m
        cnt = jnp.sum((key_ref[...] < trial).astype(jnp.int32))
        r = jnp.where(cnt <= jnp.int32(k), trial, r)
        return r, jax.lax.shift_right_logical(m, jnp.int32(1))

    r, _ = jax.lax.fori_loop(0, 31, body, (r0, jnp.int32(1 << 30)))

    # The median float is the (unique) value whose key equals r; recover it as a
    # masked max so no scalar int->float bitcast is needed in-kernel.
    median = jnp.max(jnp.where(key_ref[...] <= r, x_ref[...],
                               jnp.float32(-jnp.inf)))
    o_ref[...] = (x_ref[...] > median).astype(jnp.float32)


# ----------------------------------------------------------------------------
# Streaming path (inputs larger than the resident threshold).
# ----------------------------------------------------------------------------
def _median_select_kernel(mask_ref, x_ref, med_key_ref, count_sm, *, k):
    """One bit-bisection step x one row tile of the streamed radix select."""
    b = pl.program_id(0)                 # bit step: 0 -> bit 31 (sign) ... 31 -> bit 0
    t = pl.program_id(1)                 # row-tile index
    nt = pl.num_programs(1)

    @pl.when(jnp.logical_and(b == 0, t == 0))
    def _init():
        med_key_ref[0, 0] = jnp.int32(_INT32_MIN)

    @pl.when(t == 0)
    def _reset_count():
        count_sm[0] = jnp.int32(0)

    # XOR clears the sign bit on step 0 and sets the (still-zero) lower bit on
    # later steps, so one rule covers all 32 steps.
    trial = med_key_ref[0, 0] ^ mask_ref[b]

    bits = pltpu.bitcast(x_ref[...], jnp.int32)
    key = jnp.where(bits >= 0, bits, bits ^ jnp.int32(_KEY_FLIP))
    count_sm[0] = count_sm[0] + jnp.sum((key < trial).astype(jnp.int32))

    @pl.when(t == nt - 1)
    def _commit():
        med_key_ref[0, 0] = jnp.where(count_sm[0] <= jnp.int32(k),
                                      trial, med_key_ref[0, 0])


def _binarize_kernel(med_ref, x_ref, o_ref):
    """Lane-dense elementwise binarize: (x > median) as float32."""
    o_ref[...] = (x_ref[...] > med_ref[0, 0]).astype(jnp.float32)


# ----------------------------------------------------------------------------
# Wrapper.
# ----------------------------------------------------------------------------
@functools.partial(jax.jit, static_argnums=(1,))
def _balanced_binarize_impl(x, force_streaming):
    orig_shape = x.shape
    xf = jnp.ravel(x).astype(jnp.float32)
    n = xf.shape[0]
    assert n >= 1
    assert n < 2 ** 31, "int32 radix-select counts would overflow"
    k = (n - 1) // 2                     # torch.median -> lower median

    # Pad value: the float whose bit pattern maps to key == INT32_MAX, so pads
    # never contribute to any strict-< count (and binarize to 0.0 / get sliced).
    pad_val = jax.lax.bitcast_convert_type(jnp.int32(_KEY_FLIP), jnp.float32)

    resident = (not force_streaming) and (n <= RESIDENT_MAX_ELEMS)

    if resident:
        # ---- Fused resident path: pad (only if ragged) to whole 128-lane rows.
        n_rows = pl.cdiv(n, LANE)
        n_pad = n_rows * LANE
        if n_pad != n:
            xf = jnp.concatenate(
                [xf, jnp.full((n_pad - n,), pad_val, dtype=jnp.float32)])
        x2d = xf.reshape(n_rows, LANE)

        out2d = pl.pallas_call(
            functools.partial(_fused_select_binarize_kernel, k=k),
            out_shape=jax.ShapeDtypeStruct((n_rows, LANE), jnp.float32),
            grid=(1,),
            in_specs=[pl.BlockSpec((n_rows, LANE), lambda i: (0, 0))],
            out_specs=pl.BlockSpec((n_rows, LANE), lambda i: (0, 0)),
            scratch_shapes=[pltpu.VMEM((n_rows, LANE), jnp.int32)],
            compiler_params=pltpu.CompilerParams(
                dimension_semantics=("arbitrary",),
                vmem_limit_bytes=RESIDENT_VMEM_LIMIT),
        )(x2d)

        out = out2d
        if n_pad != n:
            out = out.reshape(-1)[:n]
        return out.reshape(orig_shape)

    # ---- Streaming path: pad rows up to a multiple of the tile.
    n_rows_min = pl.cdiv(n, SUBLANE * LANE) * SUBLANE        # multiple of 8
    tile_rows = min(MAX_TILE_ROWS, n_rows_min)               # multiple of 8
    n_tiles = pl.cdiv(n_rows_min, tile_rows)
    n_rows = n_tiles * tile_rows
    n_pad = n_rows * LANE
    xf = jnp.concatenate(
        [xf, jnp.full((n_pad - n,), pad_val, dtype=jnp.float32)])
    x2d = xf.reshape(n_rows, LANE)

    # Bit masks, indexed by grid step (bit 31 first).  1 << 31 wraps to INT32_MIN.
    bit_masks = jnp.asarray(
        np.array([1 << (31 - i) for i in range(32)], dtype=np.uint64)
        .astype(np.uint32).view(np.int32))

    # Pass 1: median-key selection (sequential carry over bits and tiles).
    med_key = pl.pallas_call(
        functools.partial(_median_select_kernel, k=k),
        out_shape=jax.ShapeDtypeStruct((1, 1), jnp.int32),
        grid_spec=pltpu.PrefetchScalarGridSpec(
            num_scalar_prefetch=0,
            grid=(32, n_tiles),
            in_specs=[
                pl.BlockSpec(memory_space=pltpu.MemorySpace.SMEM),      # bit masks
                pl.BlockSpec((tile_rows, LANE), lambda b, t: (t, 0)),   # x tiles
            ],
            out_specs=pl.BlockSpec((1, 1), lambda b, t: (0, 0),
                                   memory_space=pltpu.MemorySpace.SMEM),
            scratch_shapes=[pltpu.SMEM((1,), jnp.int32)],               # count acc
        ),
        compiler_params=pltpu.CompilerParams(
            dimension_semantics=("arbitrary", "arbitrary"),
            vmem_limit_bytes=STREAM_VMEM_LIMIT),
    )(bit_masks, x2d)

    # Convert the winning key back to its float value (the remap is involutive).
    fbits = jnp.where(med_key >= 0, med_key, med_key ^ jnp.int32(_KEY_FLIP))
    median = jax.lax.bitcast_convert_type(fbits, jnp.float32)           # (1, 1)

    # Pass 2: pipelined, lane-dense binarize (parallel grid).
    out2d = pl.pallas_call(
        _binarize_kernel,
        out_shape=jax.ShapeDtypeStruct((n_rows, LANE), jnp.float32),
        grid_spec=pltpu.PrefetchScalarGridSpec(
            num_scalar_prefetch=0,
            grid=(n_tiles,),
            in_specs=[
                pl.BlockSpec(memory_space=pltpu.MemorySpace.SMEM),      # median
                pl.BlockSpec((tile_rows, LANE), lambda t: (t, 0)),
            ],
            out_specs=pl.BlockSpec((tile_rows, LANE), lambda t: (t, 0)),
        ),
        compiler_params=pltpu.CompilerParams(
            dimension_semantics=("parallel",),
            vmem_limit_bytes=STREAM_VMEM_LIMIT),
    )(median, x2d)

    return out2d.reshape(-1)[:n].reshape(orig_shape)


def balanced_binarize(x):
    """JAX wrapper reproducing BalancedBinarize.forward(x)."""
    return _balanced_binarize_impl(x, False)


if __name__ == "__main__":
    # BalancedBinarize has no parameters; build a deterministic NCHW input.
    key = jax.random.PRNGKey(0)
    x = jax.random.normal(key, (2, 4, 16, 16), dtype=jnp.float32)

    y = jax.block_until_ready(balanced_binarize(x))

    # Pure-JAX reference for torch.median's lower-median semantics.
    n = x.size
    med_ref = jnp.sort(x.reshape(-1))[(n - 1) // 2]
    ref = (x > med_ref).astype(jnp.float32)

    assert y.shape == x.shape and y.dtype == jnp.float32
    assert bool(jnp.array_equal(y, ref))

    # Also exercise the streaming (>VMEM) path on a ragged, multi-tile size.
    key2 = jax.random.PRNGKey(1)
    x2 = jax.random.normal(key2, (600_000,), dtype=jnp.float32)
    y2 = jax.block_until_ready(_balanced_binarize_impl(x2, True))
    med2 = jnp.sort(x2)[(x2.size - 1) // 2]
    ref2 = (x2 > med2).astype(jnp.float32)
    assert bool(jnp.array_equal(y2, ref2))

    print("KERNEL_OK")
</pallas_src>

<mosaic_0001>
module attributes {stable_mosaic.version = 11 : i64} {
  func.func @_fused_select_binarize_kernel(%arg0: i32, %arg1: memref<16x128xf32, #tpu.memory_space<vmem>>, %arg2: memref<16x128xf32, #tpu.memory_space<vmem>>, %arg3: memref<16x128xi32, #tpu.memory_space<vmem>>) attributes {dimension_semantics = [#tpu.dimension_semantics<arbitrary>], iteration_bounds = array<i64: 1>, scalar_prefetch = 0 : i64, scratch_operands = 1 : i64, tpu.core_type = #tpu.core_type<tc>, window_params = [{pipeline_mode = #tpu.pipeline_mode<synchronous>, transform_indices = @transform_0, window_bounds = array<i64: 16, 128>}, {pipeline_mode = #tpu.pipeline_mode<synchronous>, transform_indices = @transform_1, window_bounds = array<i64: 16, 128>}]} {
    %c0 = arith.constant 0 : index
    %c0_0 = arith.constant 0 : index
    %0 = vector.load %arg1[%c0, %c0_0] : memref<16x128xf32, #tpu.memory_space<vmem>>, vector<16x128xf32>
    %1 = tpu.bitcast %0 : vector<16x128xf32> -> vector<16x128xi32>
    %c0_i32 = arith.constant 0 : i32
    %2 = vector.broadcast %c0_i32 : i32 to vector<16x128xi32>
    %3 = arith.cmpi sge, %1, %2 : vector<16x128xi32>
    %c2147483647_i32 = arith.constant 2147483647 : i32
    %4 = vector.broadcast %c2147483647_i32 : i32 to vector<16x128xi32>
    %5 = arith.xori %1, %4 : vector<16x128xi32>
    %6 = arith.select %3, %1, %5 : vector<16x128xi1>, vector<16x128xi32>
    %c0_1 = arith.constant 0 : index
    %c0_2 = arith.constant 0 : index
    %7 = vector.load %arg3[%c0_1, %c0_2] : memref<16x128xi32, #tpu.memory_space<vmem>>, vector<16x128xi32>
    tpu.vector_store %arg3[%c0_1, %c0_2], %6 {strides = array<i32>} : memref<16x128xi32, #tpu.memory_space<vmem>>, vector<16x128xi32>,
    %c0_3 = arith.constant 0 : index
    %c0_4 = arith.constant 0 : index
    %8 = vector.load %arg3[%c0_3, %c0_4] : memref<16x128xi32, #tpu.memory_space<vmem>>, vector<16x128xi32>
    %c0_i32_5 = arith.constant 0 : i32
    %9 = vector.broadcast %c0_i32_5 : i32 to vector<16x128xi32>
    %10 = arith.cmpi slt, %8, %9 : vector<16x128xi32>
    %11 = arith.extui %10 : vector<16x128xi1> to vector<16x128xi32>
    %12 = vector.shape_cast %11 : vector<16x128xi32> to vector<1x16x128xi32>
    %cst = arith.constant dense<0> : vector<1xi32>
    %13 = vector.multi_reduction <add>, %12, %cst [1, 2] : vector<1x16x128xi32> to vector<1xi32>
    %14 = vector.shape_cast %13 : vector<1xi32> to vector<1x1x1xi32>
    %15 = vector.extract %14[0, 0, 0] : i32 from vector<1x1x1xi32>
    %c1023_i32 = arith.constant 1023 : i32
    %16 = arith.cmpi sle, %15, %c1023_i32 : i32
    %c0_i32_6 = arith.constant 0 : i32
    %c-2147483648_i32 = arith.constant -2147483648 : i32
    %17 = arith.select %16, %c0_i32_6, %c-2147483648_i32 : i32
    %c1073741824_i32 = arith.constant 1073741824 : i32
    %c0_i32_7 = arith.constant 0 : i32
    %c31_i32 = arith.constant 31 : i32
    %18 = arith.addi %c0_i32_7, %c31_i32 : i32
    %c1_i32 = arith.constant 1 : i32
    %19:2 = scf.for %arg4 = %c0_i32_7 to %18 step %c1_i32 iter_args(%arg5 = %17, %arg6 = %c1073741824_i32) -> (i32, i32)  : i32 {
      %36 = arith.ori %arg5, %arg6 : i32
      %c0_18 = arith.constant 0 : index
      %c0_19 = arith.constant 0 : index
      %37 = vector.load %arg3[%c0_18, %c0_19] : memref<16x128xi32, #tpu.memory_space<vmem>>, vector<16x128xi32>
      %38 = vector.broadcast %36 : i32 to vector<16x128xi32>
      %39 = arith.cmpi slt, %37, %38 : vector<16x128xi32>
      %40 = arith.extui %39 : vector<16x128xi1> to vector<16x128xi32>
      %41 = vector.shape_cast %40 : vector<16x128xi32> to vector<1x16x128xi32>
      %cst_20 = arith.constant dense<0> : vector<1xi32>
      %42 = vector.multi_reduction <add>, %41, %cst_20 [1, 2] : vector<1x16x128xi32> to vector<1xi32>
      %43 = vector.shape_cast %42 : vector<1xi32> to vector<1x1x1xi32>
      %44 = vector.extract %43[0, 0, 0] : i32 from vector<1x1x1xi32>
      %c1023_i32_21 = arith.constant 1023 : i32
      %45 = arith.cmpi sle, %44, %c1023_i32_21 : i32
      %46 = arith.select %45, %36, %arg5 : i32
      %c1_i32_22 = arith.constant 1 : i32
      %47 = arith.shrui %arg6, %c1_i32_22 : i32
      scf.yield %46, %47 : i32, i32
    }
    %c0_8 = arith.constant 0 : index
    %c0_9 = arith.constant 0 : index
    %20 = vector.load %arg3[%c0_8, %c0_9] : memref<16x128xi32, #tpu.memory_space<vmem>>, vector<16x128xi32>
    %21 = vector.broadcast %19#0 : i32 to vector<16x128xi32>
    %22 = arith.cmpi sle, %20, %21 : vector<16x128xi32>
    %c0_10 = arith.constant 0 : index
    %c0_11 = arith.constant 0 : index
    %23 = vector.load %arg1[%c0_10, %c0_11] : memref<16x128xf32, #tpu.memory_space<vmem>>, vector<16x128xf32>
    %cst_12 = arith.constant 0xFF800000 : f32
    %24 = vector.broadcast %cst_12 : f32 to vector<16x128xf32>
    %25 = arith.select %22, %23, %24 : vector<16x128xi1>, vector<16x128xf32>
    %26 = vector.shape_cast %25 : vector<16x128xf32> to vector<1x16x128xf32>
    %cst_13 = arith.constant dense<0xFF800000> : vector<1xf32>
    %27 = vector.multi_reduction <maximumf>, %26, %cst_13 [1, 2] : vector<1x16x128xf32> to vector<1xf32>
    %28 = vector.shape_cast %27 : vector<1xf32> to vector<1x1x1xf32>
    %29 = vector.extract %28[0, 0, 0] : f32 from vector<1x1x1xf32>
    %c0_14 = arith.constant 0 : index
    %c0_15 = arith.constant 0 : index
    %30 = vector.load %arg1[%c0_14, %c0_15] : memref<16x128xf32, #tpu.memory_space<vmem>>, vector<16x128xf32>
    %31 = vector.broadcast %29 : f32 to vector<16x128xf32>
    %32 = arith.cmpf ogt, %30, %31 : vector<16x128xf32>
    %33 = arith.extui %32 : vector<16x128xi1> to vector<16x128xi32>
    %34 = arith.sitofp %33 : vector<16x128xi32> to vector<16x128xf32>
    %c0_16 = arith.constant 0 : index
    %c0_17 = arith.constant 0 : index
    %35 = vector.load %arg2[%c0_16, %c0_17] : memref<16x128xf32, #tpu.memory_space<vmem>>, vector<16x128xf32>
    tpu.vector_store %arg2[%c0_16, %c0_17], %34 {strides = array<i32>} : memref<16x128xf32, #tpu.memory_space<vmem>>, vector<16x128xf32>,
    return
  }
  func.func @transform_0(%arg0: i32) -> (i32, i32) {
    %c0_i32 = arith.constant 0 : i32
    %c0_i32_0 = arith.constant 0 : i32
    %c0_i32_1 = arith.constant 0 : i32
    return %c0_i32, %c0_i32_0 : i32, i32
  }
  func.func @transform_1(%arg0: i32) -> (i32, i32) {
    %c0_i32 = arith.constant 0 : i32
    %c0_i32_0 = arith.constant 0 : i32
    %c0_i32_1 = arith.constant 0 : i32
    return %c0_i32, %c0_i32_0 : i32, i32
  }
}

</mosaic_0001>

<bundles_post_ra>
// kernel: _balanced_binarize_impl.1
= control target key start
LH: loop header
LB: loop body
LE: loop exit
PB: predicated region body
PF: predicated region fallthrough
CT: control target
= control target key end

     0   :  { %v187_v6 = vmov 0   ;;  %s214_s12 = smov 1073741824   ;;  %s218_s13 = smov 0   ;;  %s260_s0 = inlined_call_operand.vmem [shape: f32[16,128], index: 0, kind: input, shape index: {}]   ;;  %s261_s1 = inlined_call_operand.vmem [shape: f32[16,128], index: 1, kind: output, shape index: {}]  }
   0x1   :  { %v8_v0 = vld [vmem:[%s260_s0] sm:$0xff]  ;;  %v9_v1 = vld [vmem:[%s260_s0 + $0x8] sm:$0xff] }
   0x2   :  { %vm12_vm0 = vcmp.ge.s32.totalorder %v8_v0, 0  ;;  %vm13_vm1 = vcmp.ge.s32.totalorder %v9_v1, 0  ;;  %v14_v2 = vxor.u32 2147483647, %v8_v0  ;;  %v15_v3 = vxor.u32 2147483647, %v9_v1 }
   0x4   :  { %v206_v4 = vsel %vm12_vm0, %v8_v0, %v14_v2  ;;  %v208_v5 = vsel %vm13_vm1, %v9_v1, %v15_v3 }
   0x5   :  { %18 = vst [vmem:[#allocation2] sm:$0xff] %v206_v4  ;;  %19 = vst [vmem:[#allocation2 + $0x8] sm:$0xff] %v208_v5  ;;  %vm22_vm2 = vcmp.lt.s32.totalorder %v206_v4, 0  ;;  %vm23_vm3 = vcmp.lt.s32.totalorder %v208_v5, 0 }
   0x6   :  { %v24_v7 = vsel %vm22_vm2, 1, %v187_v6  ;;  %v25_v8 = vsel %vm23_vm3, 1, %v187_v6 }
   0x7   :  { %v26_v9 = vadd.s32 %v25_v8, %v24_v7 }
   0x9   :  { %v28_v10 = vshrl.u32 %v26_v9, 16  ;;  %v27_v11 = vand.u32 65535, %v26_v9 }
   0xb   :  { %v30_v12 = vcvt.s32.f32 %v28_v10  ;;  %v29_v13 = vcvt.s32.f32 %v27_v11 }
   0xd   :  { %33 = vadd.xlane.f32.xlu0 %v30_v12 }
  0x11   :  { %31 = vadd.xlane.f32.xlu0 %v29_v13 }
  0x9a   :  { %v34_v14 = vpop.xlane.xlu0 %33 }
  0x9b   :  { %v36_v15 = vcvt.f32.s32 %v34_v14 }
  0x9d   :  { %v37_v17 = vshll.u32 %v36_v15, 16 }
  0x9e   :  { %v32_v16 = vpop.xlane.xlu0 %31 }
  0x9f   :  { %v35_v18 = vcvt.f32.s32 %v32_v16 }
  0xa1   :  { %v38_v19 = vadd.s32 %v37_v17, %v35_v18 }
  0xa3   :  { %v39_v20 = vrot.slane %v38_v19, 4 }
  0xa5   :  { %v40_v21 = vadd.s32 %v39_v20, %v38_v19 }
  0xa7   :  { %v41_v22 = vrot.slane %v40_v21, 2 }
  0xa9   :  { %v42_v23 = vadd.s32 %v41_v22, %v40_v21 }
  0xab   :  { %v43_v24 = vrot.slane %v42_v23, 1 }
  0xad   :  { %v44_v25 = vadd.s32 %v43_v24, %v42_v23 }
  0xaf   :  { %130 = vpush %v44_v25 }
  0xe0   :  { %s131_s10 = spop %130 }
  0xe1   :  { %p46_p0 = scmp.le.s32.totalorder %s131_s10, 1023 }
  0xe3   :  { %s47_s11 = scalar_select %p46_p0, 0, 2147483648  }
  0xe4 LB: > { %v57_v26 = vld [vmem:[#allocation2] sm:$0xff]  ;;  %v58_v27 = vld [vmem:[#allocation2 + $0x8] sm:$0xff]  ;;  %s231_s14 = sor.u32 %s177_s12, %s181_s11  ;;  %s86_s15 = sshrl.u32 %s177_s12, 1   ;;  %v188_v29 = vmov 0   ;;  %s185_s13 = sphi %s218_s13, %s53_s13   ;;  %s181_s11 = sphi %s47_s11, %s263_s11   ;;  %s177_s12 = sphi %s214_s12, %s262_s12  }
  0xe5   : > { %v59_v28 = vstv %s231_s14  ;;  %s53_s13 = sadd.s32 1, %s185_s13   ;;  %s262_s12 = smov %s86_s15 }
  0xe6   : > { %vm60_vm4 = vcmp.lt.s32.totalorder %v57_v26, %v59_v28  ;;  %vm61_vm5 = vcmp.lt.s32.totalorder %v58_v27, %v59_v28  ;;  %p50_p2 = scmp.ge.s32.totalorder %s53_s13, 31  }
  0xe7   : > { %v62_v30 = vsel %vm60_vm4, 1, %v188_v29  ;;  %v63_v31 = vsel %vm61_vm5, 1, %v188_v29  ;;  %v90_v50 = vld [vmem:[%s260_s0] sm:$0xff] (%p50_p2)  ;;  %v91_v51 = vld [vmem:[%s260_s0 + $0x8] sm:$0xff] (%p50_p2)  ;;  %v189_v63 = vmov (%p50_p2), 0.0  }
  0xe8   : > { %v64_v32 = vadd.s32 %v63_v31, %v62_v30 }
  0xea   : > { %v66_v33 = vshrl.u32 %v64_v32, 16  ;;  %v65_v34 = vand.u32 65535, %v64_v32 }
  0xec   : > { %v68_v35 = vcvt.s32.f32 %v66_v33  ;;  %v67_v36 = vcvt.s32.f32 %v65_v34 }
  0xee   : > { %71 = vadd.xlane.f32.xlu0 %v68_v35 }
  0xf2   : > { %69 = vadd.xlane.f32.xlu0 %v67_v36 }
 0x17b   : > { %v72_v37 = vpop.xlane.xlu0 %71 }
 0x17c   : > { %v74_v38 = vcvt.f32.s32 %v72_v37 }
 0x17e   : > { %v75_v40 = vshll.u32 %v74_v38, 16 }
 0x17f   : > { %v70_v39 = vpop.xlane.xlu0 %69 }
 0x180   : > { %v73_v41 = vcvt.f32.s32 %v70_v39 }
 0x182   : > { %v76_v42 = vadd.s32 %v75_v40, %v73_v41 }
 0x184   : > { %v77_v43 = vrot.slane %v76_v42, 4 }
 0x186   : > { %v78_v44 = vadd.s32 %v77_v43, %v76_v42 }
 0x188   : > { %v79_v45 = vrot.slane %v78_v44, 2 }
 0x18a   : > { %v80_v46 = vadd.s32 %v79_v45, %v78_v44 }
 0x18c   : > { %v81_v47 = vrot.slane %v80_v46, 1 }
 0x18e   : > { %v82_v48 = vadd.s32 %v81_v47, %v80_v46 }
 0x190   : > { %132 = vpush %v82_v48 }
 0x1bf   :  { %52 = sbr.rel (!%p50_p2) target bundleno = 228 (0xe4), region = 31 }
 0x1c1   : > { %s133_s16 = spop %132 }
 0x1c2   : > { %p84_p1 = scmp.le.s32.totalorder %s133_s16, 1023 }
 0x1c4   : > { %s265_s14 = smov (!%p84_p1, %s231_s14), %s181_s11 }
 0x1c5   : > { %s263_s11 = smov %s265_s14  ;;  %v87_v49 = vstv (%p50_p2), %s265_s14 }
 0x1c6   :  { %vm88_vm6 = vcmp.le.s32.totalorder %v206_v4, %v87_v49  ;;  %vm89_vm7 = vcmp.le.s32.totalorder %v208_v5, %v87_v49 }
 0x1c7   :  { %v92_v52 = vsel %vm88_vm6, %v90_v50, -inf  ;;  %v93_v53 = vsel %vm89_vm7, %v91_v51, -inf }
 0x1c8   :  { %v94_v54 = vmax.f32 %v92_v52, %v93_v53 }
 0x1ca   :  { %95 = vmax.xlane.f32.xlu0 %v94_v54 }
 0x257   :  { %v96_v55 = vpop.xlane.xlu0 %95 }
 0x258   :  { %v97_v56 = vrot.slane %v96_v55, 4 }
 0x25a   :  { %v98_v57 = vmax.f32 %v96_v55, %v97_v56 }
 0x25c   :  { %v99_v58 = vrot.slane %v98_v57, 2 }
 0x25e   :  { %v100_v59 = vmax.f32 %v98_v57, %v99_v58 }
 0x260   :  { %v101_v60 = vrot.slane %v100_v59, 1 }
 0x262   :  { %v102_v61 = vmax.f32 %v100_v59, %v101_v60 }
 0x264   :  { %134 = vpush %v102_v61 }
 0x295   :  { %s135_s21 = spop %134 }
 0x296   :  { %v104_v62 = vstv %s135_s21 }
 0x297   :  { %vm105_vm8 = vcmp.gt.f32.partialorder %v90_v50, %v104_v62  ;;  %vm106_vm9 = vcmp.gt.f32.partialorder %v91_v51, %v104_v62 }
 0x298   :  { %v128_v0 = vsel %vm105_vm8, 1.0, %v189_v63  ;;  %v129_v1 = vsel %vm106_vm9, 1.0, %v189_v63 }
 0x299   :  { %111 = vst [vmem:[%s261_s1] sm:$0xff] %v128_v0  ;;  %112 = vst [vmem:[%s261_s1 + $0x8] sm:$0xff] %v129_v1 }

</bundles_post_ra>
